<compile_context>
chip_gen: v6e
topology: v6e:2x2x1
jax: 0.10.0
libtpu: 0.0.40
codegen_flags: <defaults>
</compile_context>

<pallas_src>
import jax
import jax.numpy as jnp
from jax.experimental import pallas as pl
from jax.experimental.pallas import tpu as pltpu


def _round_up(v: int, m: int) -> int:
    return ((v + m - 1) // m) * m


def _mm_bias_relu_kernel(w_ref, p_ref, b_ref, o_ref):
    """Single-K fast path: o = relu(W @ P + bias), accumulate in f32."""
    y = jnp.dot(w_ref[...], p_ref[...], preferred_element_type=jnp.float32)
    o_ref[...] = jnp.maximum(y + b_ref[...], 0.0).astype(o_ref.dtype)


def _mm_bias_relu_acc_kernel(w_ref, p_ref, b_ref, o_ref, acc_ref):
    """Multi-K path: f32 accumulator, epilogue (+bias, ReLU, downcast) on last K."""
    k = pl.program_id(3)

    @pl.when(k == 0)
    def _init():
        acc_ref[...] = jnp.zeros_like(acc_ref)

    acc_ref[...] += jnp.dot(
        w_ref[...], p_ref[...], preferred_element_type=jnp.float32
    )

    @pl.when(k == pl.num_programs(3) - 1)
    def _finalize():
        o_ref[...] = jnp.maximum(
            acc_ref[...] + b_ref[...], 0.0
        ).astype(o_ref.dtype)


def conv_module_forward(
    x: jax.Array,
    weight: jax.Array,
    gamma: jax.Array,
    beta: jax.Array,
    running_mean: jax.Array,
    running_var: jax.Array,
    *,
    stride: int = 1,
    padding: int = 0,
    groups: int = 1,
    eps: float = 1e-3,
) -> jax.Array:
    """Fused Conv2d(bias=False) + BatchNorm2d(eval) + ReLU.  x: (B, C1, H, W)."""
    if groups != 1:
        # TODO(synk): grouped conv (g > 1) has no Pallas path here.
        raise NotImplementedError("groups != 1 not supported")

    out_dtype = x.dtype
    cdt = x.dtype  # MXU operand dtype: keep bf16 as bf16 (native path), f32 as f32

    B, C1, H, W = x.shape
    C2, C1w, kh, kw = weight.shape
    assert C1w == C1, "channel mismatch"
    Ho = (H + 2 * padding - kh) // stride + 1
    Wo = (W + 2 * padding - kw) // stride + 1
    Nsp = Ho * Wo
    Kdim = C1 * kh * kw

    # ---- fold eval-mode BatchNorm into the weights (scale) and a bias vector.
    f32 = jnp.float32
    scale = gamma.astype(f32) * jax.lax.rsqrt(running_var.astype(f32) + eps)
    bias = beta.astype(f32) - running_mean.astype(f32) * scale
    W2 = (weight.reshape(C2, Kdim).astype(f32) * scale[:, None]).astype(cdt)

    # ---- patches in (B, K, Ho*Wo) layout (lane-dense along spatial).
    if kh == 1 and kw == 1 and stride == 1 and padding == 0:
        patches = x.reshape(B, C1, Nsp)  # pure reshape: no HBM copy, no transpose
    else:
        # TODO(synk): materialized im2col (XLA pre-pass); in-kernel tap addressing
        #             is not implemented.
        xp = jnp.pad(x, ((0, 0), (0, 0), (padding, padding), (padding, padding)))
        taps = []
        for dy in range(kh):
            for dx in range(kw):
                taps.append(
                    xp[:, :, dy:dy + stride * Ho:stride, dx:dx + stride * Wo:stride]
                )  # (B, C1, Ho, Wo)
        pat = jnp.stack(taps, axis=2)          # (B, C1, kh*kw, Ho, Wo)
        patches = pat.reshape(B, Kdim, Nsp)    # K ordering matches OIHW flatten
    patches = patches.astype(cdt)

    itemsize = jnp.dtype(cdt).itemsize

    # ---- output-channel (sublane) tiling: full dim when small (no padding).
    if C2 <= 512:
        tc2, C2p = C2, C2
    else:
        tc2 = 256                              # MXU-aligned (2x256x256 on v6e/v7x)
        C2p = _round_up(C2, tc2)

    # ---- contraction (K) tiling: full dim (single block, no padding) when small.
    single_k = Kdim <= 2048
    if single_k:
        tk, Kp = Kdim, Kdim
    else:
        tk = 512                               # multiple of 128 (weight lane dim)
        Kp = _round_up(Kdim, tk)

    if C2p != C2:
        W2 = jnp.pad(W2, ((0, C2p - C2), (0, 0)))
        bias = jnp.pad(bias, (0, C2p - C2))
    if Kp != Kdim:
        # TODO(synk): K-padding copies the im2col tensor; only hit when Kdim > 2048.
        W2 = jnp.pad(W2, ((0, 0), (0, Kp - Kdim)))
        patches = jnp.pad(patches, ((0, 0), (0, Kp - Kdim), (0, 0)))

    bias2 = bias.reshape(C2p, 1)

    # ---- spatial (lane) tiling: ~4 MiB blocks so the double-buffered pipeline
    # stays far below 64 MiB (v7x per-TC VMEM); raise the scoped limit so v5e's
    # 16 MiB default is not the constraint.
    LANE = 128
    budget = 4 << 20
    tn = min(budget // max(1, itemsize * tk), budget // max(1, 4 * tc2))
    tn = max(LANE, (tn // LANE) * LANE)
    tn = min(tn, 8192)
    if tn >= Nsp:
        tn = Nsp                               # single full-dim block (always legal)
    n_n = pl.cdiv(Nsp, tn)

    out_shape = jax.ShapeDtypeStruct((B, C2p, Nsp), out_dtype)

    if single_k:
        grid = (B, C2p // tc2, n_n)
        out3 = pl.pallas_call(
            _mm_bias_relu_kernel,
            out_shape=out_shape,
            grid_spec=pltpu.PrefetchScalarGridSpec(
                num_scalar_prefetch=0,
                grid=grid,
                in_specs=[
                    pl.BlockSpec((tc2, tk), lambda b, i, j: (i, 0)),        # weights (BN-folded)
                    pl.BlockSpec((None, tk, tn), lambda b, i, j: (b, 0, j)),  # patches
                    pl.BlockSpec((tc2, 1), lambda b, i, j: (i, 0)),         # bn bias
                ],
                out_specs=pl.BlockSpec((None, tc2, tn), lambda b, i, j: (b, i, j)),
            ),
            compiler_params=pltpu.CompilerParams(
                dimension_semantics=("parallel", "parallel", "parallel"),
                vmem_limit_bytes=48 << 20,
            ),
        )(W2, patches, bias2)
    else:
        grid = (B, C2p // tc2, n_n, Kp // tk)
        out3 = pl.pallas_call(
            _mm_bias_relu_acc_kernel,
            out_shape=out_shape,
            grid_spec=pltpu.PrefetchScalarGridSpec(
                num_scalar_prefetch=0,
                grid=grid,
                in_specs=[
                    pl.BlockSpec((tc2, tk), lambda b, i, j, k: (i, k)),
                    pl.BlockSpec((None, tk, tn), lambda b, i, j, k: (b, k, j)),
                    pl.BlockSpec((tc2, 1), lambda b, i, j, k: (i, 0)),
                ],
                out_specs=pl.BlockSpec((None, tc2, tn), lambda b, i, j, k: (b, i, j)),
                scratch_shapes=[pltpu.VMEM((tc2, tn), jnp.float32)],
            ),
            compiler_params=pltpu.CompilerParams(
                dimension_semantics=("parallel", "parallel", "parallel", "arbitrary"),
                vmem_limit_bytes=48 << 20,
            ),
        )(W2, patches, bias2)

    out = out3[:, :C2] if C2p != C2 else out3
    return out.reshape(B, C2, Ho, Wo)          # free: layout already (B, C2, Ho*Wo)


def conv_module_reference(x, weight, gamma, beta, mean, var, *,
                          stride=1, padding=0, eps=1e-3):
    """Pure-JAX reference: conv2d + eval-mode BatchNorm + ReLU (f32)."""
    y = jax.lax.conv_general_dilated(
        x.astype(jnp.float32), weight.astype(jnp.float32),
        window_strides=(stride, stride),
        padding=[(padding, padding), (padding, padding)],
        dimension_numbers=("NCHW", "OIHW", "NCHW"),
        precision=jax.lax.Precision.HIGHEST,
    )
    scale = gamma / jnp.sqrt(var + eps)
    bias = beta - mean * scale
    y = y * scale[None, :, None, None] + bias[None, :, None, None]
    return jnp.maximum(y, 0.0)


if __name__ == "__main__":
    key = jax.random.PRNGKey(0)
    kx, kw1, kw3, kg, kb, km, kv = jax.random.split(key, 7)

    B, C1, H, W = 2, 4, 16, 16
    C2 = 8

    x = jax.random.normal(kx, (B, C1, H, W), dtype=jnp.float32)
    gamma = 1.0 + 0.1 * jax.random.normal(kg, (C2,), dtype=jnp.float32)
    beta = 0.1 * jax.random.normal(kb, (C2,), dtype=jnp.float32)
    mean = 0.1 * jax.random.normal(km, (C2,), dtype=jnp.float32)
    var = jnp.abs(jax.random.normal(kv, (C2,), dtype=jnp.float32)) + 0.5

    # ---- config 1: ConvModule defaults (k=1, s=1, p=0, g=1, act=ReLU) ----
    w1 = 0.1 * jax.random.normal(kw1, (C2, C1, 1, 1), dtype=jnp.float32)
    y1 = jax.block_until_ready(
        conv_module_forward(x, w1, gamma, beta, mean, var, stride=1, padding=0)
    )
    r1 = conv_module_reference(x, w1, gamma, beta, mean, var, stride=1, padding=0)
    assert y1.shape == (B, C2, H, W) and y1.dtype == x.dtype
    assert jnp.allclose(y1, r1.astype(x.dtype), atol=2e-2, rtol=2e-2), "1x1 conv mismatch"

    # ---- config 2: 3x3 conv, stride 1, padding 1 (exercises im2col path) ----
    w3 = 0.1 * jax.random.normal(kw3, (C2, C1, 3, 3), dtype=jnp.float32)
    y2 = jax.block_until_ready(
        conv_module_forward(x, w3, gamma, beta, mean, var, stride=1, padding=1)
    )
    r2 = conv_module_reference(x, w3, gamma, beta, mean, var, stride=1, padding=1)
    assert y2.shape == (B, C2, H, W) and y2.dtype == x.dtype
    assert jnp.allclose(y2, r2.astype(x.dtype), atol=2e-2, rtol=2e-2), "3x3 conv mismatch"

    # ---- config 3: bf16 inputs (native MXU path, bf16 output written in-kernel) ----
    y3 = jax.block_until_ready(
        conv_module_forward(x.astype(jnp.bfloat16), w1.astype(jnp.bfloat16),
                            gamma, beta, mean, var, stride=1, padding=0)
    )
    assert y3.dtype == jnp.bfloat16 and y3.shape == (B, C2, H, W)
    assert jnp.allclose(y3.astype(jnp.float32), r1, atol=5e-2, rtol=5e-2), "bf16 mismatch"

    print("KERNEL_OK")
</pallas_src>

<mosaic_0001>
module attributes {stable_mosaic.version = 11 : i64} {
  func.func @_mm_bias_relu_kernel(%arg0: i32, %arg1: i32, %arg2: i32, %arg3: memref<8x4xf32, #tpu.memory_space<vmem>>, %arg4: memref<1x4x256xf32, #tpu.memory_space<vmem>>, %arg5: memref<8x1xf32, #tpu.memory_space<vmem>>, %arg6: memref<1x8x256xf32, #tpu.memory_space<vmem>>) attributes {dimension_semantics = [#tpu.dimension_semantics<parallel>, #tpu.dimension_semantics<parallel>, #tpu.dimension_semantics<parallel>], iteration_bounds = array<i64: 2, 1, 1>, scalar_prefetch = 0 : i64, scratch_operands = 0 : i64, tpu.core_type = #tpu.core_type<tc>, window_params = [{transform_indices = @transform_0, window_bounds = array<i64: 8, 4>}, {transform_indices = @transform_1, window_bounds = array<i64: 1, 4, 256>}, {transform_indices = @transform_2, window_bounds = array<i64: 8, 1>}, {transform_indices = @transform_3, window_bounds = array<i64: 1, 8, 256>}]} {
    %c0 = arith.constant 0 : index
    %c0_0 = arith.constant 0 : index
    %0 = vector.load %arg3[%c0, %c0_0] : memref<8x4xf32, #tpu.memory_space<vmem>>, vector<8x4xf32>
    %c0_1 = arith.constant 0 : index
    %c0_2 = arith.constant 0 : index
    %c0_3 = arith.constant 0 : index
    %1 = vector.load %arg4[%c0_1, %c0_2, %c0_3] : memref<1x4x256xf32, #tpu.memory_space<vmem>>, vector<1x4x256xf32>
    %2 = vector.shape_cast %1 : vector<1x4x256xf32> to vector<4x256xf32>
    %cst = arith.constant dense<0.000000e+00> : vector<8x256xf32>
    %3 = tpu.matmul %0, %2, %cst {dimension_numbers = #tpu.dot_dimension_numbers<[1], [0], [0], [1], [0, 0, 1, 1], [], []>} : vector<8x4xf32>, vector<4x256xf32>, vector<8x256xf32> -> vector<8x256xf32>
    %c0_4 = arith.constant 0 : index
    %c0_5 = arith.constant 0 : index
    %4 = vector.load %arg5[%c0_4, %c0_5] : memref<8x1xf32, #tpu.memory_space<vmem>>, vector<8x1xf32>
    %5 = vector.broadcast %4 : vector<8x1xf32> to vector<8x256xf32>
    %6 = arith.addf %3, %5 : vector<8x256xf32>
    %cst_6 = arith.constant 0.000000e+00 : f32
    %7 = vector.broadcast %cst_6 : f32 to vector<8x256xf32>
    %8 = arith.maximumf %6, %7 : vector<8x256xf32>
    %c0_7 = arith.constant 0 : index
    %c0_8 = arith.constant 0 : index
    %c0_9 = arith.constant 0 : index
    %9 = vector.load %arg6[%c0_7, %c0_8, %c0_9] : memref<1x8x256xf32, #tpu.memory_space<vmem>>, vector<1x8x256xf32>
    %10 = vector.shape_cast %9 : vector<1x8x256xf32> to vector<8x256xf32>
    %11 = vector.shape_cast %8 : vector<8x256xf32> to vector<1x8x256xf32>
    tpu.vector_store %arg6[%c0_7, %c0_8, %c0_9], %11 {strides = array<i32>} : memref<1x8x256xf32, #tpu.memory_space<vmem>>, vector<1x8x256xf32>,
    return
  }
  func.func @transform_0(%arg0: i32, %arg1: i32, %arg2: i32) -> (i32, i32) {
    %c0_i32 = arith.constant 0 : i32
    %c0_i32_0 = arith.constant 0 : i32
    return %arg1, %c0_i32 : i32, i32
  }
  func.func @transform_1(%arg0: i32, %arg1: i32, %arg2: i32) -> (i32, i32, i32) {
    %c0_i32 = arith.constant 0 : i32
    %c0_i32_0 = arith.constant 0 : i32
    return %arg0, %c0_i32, %arg2 : i32, i32, i32
  }
  func.func @transform_2(%arg0: i32, %arg1: i32, %arg2: i32) -> (i32, i32) {
    %c0_i32 = arith.constant 0 : i32
    %c0_i32_0 = arith.constant 0 : i32
    return %arg1, %c0_i32 : i32, i32
  }
  func.func @transform_3(%arg0: i32, %arg1: i32, %arg2: i32) -> (i32, i32, i32) {
    %c0_i32 = arith.constant 0 : i32
    return %arg0, %arg1, %arg2 : i32, i32, i32
  }
}

</mosaic_0001>

<bundles_post_ra>
// kernel: tpu_custom_call.1
= control target key start
LH: loop header
LB: loop body
LE: loop exit
PB: predicated region body
PF: predicated region fallthrough
CT: control target
= control target key end

     0   :  { %8 = vsyncpa [#allocation3], 0  ;;  %s752_s0 = inlined_call_operand.vmem [shape: f32[8,4], index: 0, kind: input, shape index: {}]   ;;  %s753_s1 = inlined_call_operand.vmem [shape: f32[2,4,256], index: 1, kind: input, shape index: {}]   ;;  %s754_s2 = inlined_call_operand.vmem [shape: f32[8,1], index: 2, kind: input, shape index: {}]   ;;  %s755_s3 = inlined_call_operand.hbm [shape: f32[2,8,256], index: 3, kind: output, shape index: {}]  }
   0x1   :  { %10 = vsyncpa [#allocation3 + $0x1], 0  ;;  %s647_s12 = smov 0   ;;  %s649_s13 = smov 0  }
   0x2   :  { %s651_s14 = smov 0   ;;  %s653_s15 = smov 0  }
   0x3   :  { %s655_s16 = smov 0   ;;  %s657_s17 = smov 0  }
   0x4 LB: > { %s467_s18 = sadd.s32 4294967295, %s622_s17   ;;  %s468_s19 = sadd.s32 4294967294, %s622_s17   ;;  %s622_s17 = sphi %s657_s17, %s16_s17   ;;  %s618_s16 = sphi %s655_s16, %s762_s16   ;;  %s614_s15 = sphi %s653_s15, %s761_s15   ;;  %s610_s14 = sphi %s651_s14, %s760_s14   ;;  %s606_s13 = sphi %s649_s13, %s759_s13   ;;  %s602_s12 = sphi %s647_s12, %s758_s12  }
   0x5   : > { %s35_s20 = sadd.s32 1, %s618_s16  ;;  %s126_s21 = sadd.s32 1, %s610_s14 }
   0x6   : > { %p37_p0 = scmp.ge.s32.totalorder %s35_s20, 2  ;;  %p136_p1 = scmp.ne.s32.totalorder %s610_s14, %s606_s13 }
   0x7   : > { %p137_p2 = scmp.eq.s32.totalorder %s467_s18, 1  ;;  %p142_p3 = scmp.ne.s32.totalorder %s606_s13, %s602_s12 }
   0x8   : > { %s764_s20 = smov (%p37_p0, %s35_s20), 0  ;;  %p143_p5 = scmp.eq.s32.totalorder %s468_s19, 1 }
   0x9   : > { %p687_p4 = por %p137_p2, %p136_p1  ;;  %s119_s23 = ssub.s32 %s618_s16, %s764_s20 }
   0xa   : > { %p473_p6 = scmp.ge.s32.totalorder %s622_s17, 1  ;;  %p124_p7 = scmp.eq.s32.totalorder %s119_s23, 0 }
   0xb   : > { %p694_p8 = por %p143_p5, %p142_p3  ;;  %p188_p9 = scmp.lt.s32.totalorder %s622_s17, 3 }
   0xc   : > { %s700_s25 = scalar_select %p124_p7, %s610_s14, %s126_s21  }
   0xd   : > { %p189_p10 = pnand %p473_p6, %p188_p9 }
   0xe   : > { %p229_p11 = scmp.lt.s32.totalorder (!%p189_p10), %s614_s15, 1  ;;  %s221_s8 = sand.u32 (!%p189_p10), 1, %s606_s13  }
   0xf   : > { %192 = sbr.rel (%p189_p10) target bundleno = 241 (0xf1), region = 32  ;;  %s474_s9 = sshll.u32 (!%p189_p10), %s221_s8, 4 }
  0x10   : > { %s486_s10 = sshll.u32 (!%p189_p10), %s614_s15, 8  ;;  %s223_s11 = scalar_lea.vmem (!%p189_p10), [#allocation2], %s474_s9 }
  0x11   : > { %s356_s18 = sshll.u32 (!%p189_p10), %s223_s11, 4  ;;  %s354_s23 = scalar_lea.hbm (!%p189_p10), %s755_s3, %s486_s10  ;;  %s357_s18 = int_to_ptr.vmem [resolvable:$true] %s356_s18 }
  0x12   : > { %s338_s26 = scalar_lea.sflag (!%p189_p10), [#allocation3], %s221_s8  ;;  %s546_s27 = scalar_lea.vmem (!%p189_p10), %s357_s18, 256 }
  0x13   : > { %p547_p12 = scmp.ne.s32.totalorder (!%p189_p10), %s357_s18, %s546_s27 }
  0x14   : > { %v624_v0 = vmov 0.0   ;;  %v625_v1 = vmov 0   ;;  %v245_v2 = vld [vmem:[%s754_s2] sm:$0xff]  ;;  %s230_s28 = scalar_select %p229_p11, %s614_s15, 1  ;;  %vm257_vm0 = vcmask 1043456   ;;  %vm253_vm1 = vcmask 31744  }
  0x15   : > { %326 = vmatprep.mubr.f32.mxu0 %v624_v0  ;;  %544 = vset.pattern.permute.xlu0 %v625_v1  ;;  %v243_v5 = vld [vmem:[%s752_s0] sm:$0xff]  ;;  %p548_p13 = pnand %p547_p12, %p687_p4 }
  0x16   : > { %248 = vperm.xlu0 %544, %v245_v2   ;;  %s485_s29 = sshll.u32 %s230_s28, 3  ;;  %s626_s28 = smov [#allocation2]  }
  0x17   : > { %s236_s5 = scalar_lea.vmem %s753_s1, %s485_s29  ;;  %p549_p0 = pneg %p548_p13 }
  0x18   : > { %v244_v3 = vld [vmem:[%s236_s5] sm:$0xff]  ;;  %s550_s15 = sshll.u32 %s626_s28, 4  ;;  %s551_s15 = int_to_ptr.vmem [resolvable:$false] %s550_s15 }
  0x19   : > { %v252_v4 = vcombine.high %v244_v3, %v244_v3  ;;  %s552_s29 = scalar_lea.vmem %s551_s15, 512  ;;  %p553_p1 = scmp.lt.s32.totalorder %s357_s18, %s551_s15 }
  0x1a   : > { %p554_p2 = scmp.lt.s32.totalorder %s552_s29, %s546_s27 }
  0x1b   : > { %477 = vmatprep.subr.msk.mxu0 %vm257_vm0, %v252_v4 }
  0x1c   : > { %478 = vmatpush1.msk.msra.mxu0 %vm257_vm0, %v244_v3  ;;  %p555_p3 = por %p554_p2, %p553_p1 }
  0x1d   : > { %479 = vmatmul.mubr.msk.f32.vlgmr.msra.gmra.mxu0 %vm253_vm1, %v243_v5 }
  0x1e   : > { %p556_p5 = pnand %p555_p3, %p549_p0 }
  0x91   : > { %v249_v6 = vpop.permute.xlu0 %248 }
  0xdd   : > { %v328_v7 = vpop.f32.mrf.mxu0 }
  0xde   : > { %v329_v8 = vadd.f32 %v328_v7, %v249_v6 }
  0xdf   : > { %v330_v9 = vpop.f32.mrf.mxu0 }
  0xe0   : > { %v333_v10 = vmax.f32 %v329_v8, 0.0  ;;  %v331_v11 = vadd.f32 %v330_v9, %v249_v6 }
  0xe2   : > { %335 = vst [vmem:[%s223_s11] sm:$0xff] %v333_v10  ;;  %v334_v12 = vmax.f32 %v331_v11, 0.0 }
  0xe4   : > { %336 = vst [vmem:[%s223_s11 + $0x8] sm:$0xff] %v334_v12 }
  0xe5   : > { %559 = shalt.err (!%p556_p5)
}
  0xe6   : > { %s560_s30 = scalar_lea.hbm %s354_s23, 256  ;;  %s564_s6 = scalar_lea.hbm %s755_s3, 512 }
  0xe7   : > { %p561_p6 = scmp.ne.s32.totalorder %s354_s23, %s560_s30  ;;  %p565_p10 = scmp.lt.s32.totalorder %s354_s23, %s755_s3 }
  0xe8   : > { %p566_p11 = scmp.lt.s32.totalorder %s564_s6, %s560_s30 }
  0xe9   : > { %p562_p7 = pnand %p561_p6, %p687_p4 }
  0xea   : > { %p567_p12 = por %p566_p11, %p565_p10 }
  0xeb   : > { %p563_p9 = pneg %p562_p7 }
  0xed   : > { %p568_p13 = pnand %p567_p12, %p563_p9 }
  0xef   : > { %571 = shalt.err (!%p568_p13)
}
  0xf0   : > { %487 = dma.vmem_to_hbm [thread:$0]  (%p687_p4), %s357_s18, 256, %s354_s23, %s338_s26  }
  0xf1 PF: > { %p493_p0 = scmp.ge.s32.totalorder %s622_s17, 2  ;;  %s368_s9 = sand.u32 1, %s602_s12  }
  0xf2   : > { %s369_s10 = scalar_lea.sflag [#allocation3], %s368_s9 }
  0xf3   : > { %p490_p1 = pnand %p493_p0, %p694_p8 }
  0xf5   : > { %p491_p2 = pneg %p490_p1 }
  0xf7   : > { %597 = dma.done.wait (%p491_p2), %s369_s10, 256  }
  0xf8   : > { %599 = vsyncadd (%p491_p2), %s369_s10, 4294967040  ;;  %s16_s17 = sadd.s32 1, %s622_s17   ;;  %s758_s12 = smov %s606_s13 }
  0xf9   : > { %p13_p3 = scmp.ge.s32.totalorder %s16_s17, 4   ;;  %s759_s13 = smov %s610_s14 }
  0xfa   : > { %s760_s14 = smov %s700_s25  ;;  %s761_s15 = smov %s618_s16 }
  0xfb   : > { %s762_s16 = smov %s764_s20  ;;  %15 = sbr.rel (!%p13_p3) target bundleno = 4 (0x4), region = 73 }
 0x100   :  { %374 = vsyncpa [#allocation3], 1 }
 0x101   :  { %376 = vsyncpa [#allocation3 + $0x1], 1 }

</bundles_post_ra>
